<compile_context>
chip_gen: v5e
topology: v5e:2x2
jax: 0.10.0
libtpu: 0.0.40
codegen_flags: <defaults>
</compile_context>

<pallas_src>
import functools

import jax
import jax.numpy as jnp
from jax import lax
from jax.experimental import pallas as pl
from jax.experimental.pallas import tpu as pltpu


def _channel_attention_kernel(x_ref, wq_ref, bq_ref, wl_ref, bl_ref, o_ref, *, inv_hw):
    # x_ref / o_ref: (1, 2, Cp, HWp) VMEM block — [0,0] = left half, [0,1] = right half.
    # wq_ref / wl_ref: (k,) f32 in SMEM.  bq_ref / bl_ref: (1,) f32 in SMEM.
    Cp = x_ref.shape[2]
    k = wq_ref.shape[0]
    pad = (k - 1) // 2
    xdt = x_ref.dtype

    xl = x_ref[0, 0]            # (Cp, HWp), input dtype (no wholesale f32 copy)
    xr = x_ref[0, 1]            # (Cp, HWp)

    # Global average pool: f32 accumulation over the lane axis; 1/HW folded into a single
    # scalar multiply (the zero-padded HW tail does not perturb the sum).
    gap_l = jnp.sum(xl, axis=-1, keepdims=True, dtype=jnp.float32) * inv_hw   # (Cp, 1)
    gap_r = jnp.sum(xr, axis=-1, keepdims=True, dtype=jnp.float32) * inv_hw   # (Cp, 1)

    if Cp % 8 == 0:
        # Roll-based "same" 1-D conv over channels, O(k*Cp):
        #   out[c] = b + sum_j w[j] * gap[c + j - pad]   (zero padded at the edges)
        # Each tap = one XLU sublane rotation + an edge mask + a weighted add (VPU).
        c_col = lax.broadcasted_iota(jnp.int32, (Cp, 1), 0)

        def conv1d_col(gap_col, w_ref, b_ref):
            acc = jnp.zeros((Cp, 1), jnp.float32)
            for j in range(k):                                  # static unroll, k small & odd
                d = j - pad
                term = gap_col if d == 0 else pltpu.roll(gap_col, (-d) % Cp, axis=0)
                valid = jnp.logical_and(c_col + d >= 0, c_col + d < Cp)
                acc = acc + w_ref[j] * jnp.where(valid, term, 0.0)
            return acc + b_ref[0]                               # (Cp, 1)
    else:
        # Fallback for tiny / sublane-unaligned Cp: masked band matrix (O(k*Cp^2), but Cp
        # is small by construction on this path so the extra work is negligible).
        r = lax.broadcasted_iota(jnp.int32, (Cp, Cp), 0)        # source channel (sublane)
        c = lax.broadcasted_iota(jnp.int32, (Cp, Cp), 1)        # dest channel (lane)

        def conv1d_col(gap_col, w_ref, b_ref):
            tap = r - c + pad
            band = jnp.zeros((Cp, Cp), jnp.float32)
            for j in range(k):
                band = band + jnp.where(tap == j, w_ref[j], 0.0)
            row = jnp.sum(band * gap_col, axis=0, keepdims=True) + b_ref[0]      # (1, Cp)
            # row -> column via diagonal select + lane reduce.
            return jnp.sum(jnp.where(r == c, row, 0.0), axis=1, keepdims=True)   # (Cp, 1)

    # ---- Local branch (right half): out_r = xr * (sigmoid(conv_l(gap_r)) + 2) ----
    a_col = jax.nn.sigmoid(conv1d_col(gap_r, wl_ref, bl_ref))    # (Cp, 1) f32
    o_ref[0, 1] = (xr * (a_col + 2.0).astype(xdt)).astype(o_ref.dtype)

    # ---- Global branch (left half) ----
    q_col = jax.nn.sigmoid(conv1d_col(gap_l, wq_ref, bq_ref))    # (Cp, 1) f32
    # Single (Cp,1) -> (1,Cp) relayout for the outer product: diagonal select + sublane
    # reduce (layout-safe; one O(Cp^2) pass, same order as the exp/softmax right below).
    rr = lax.broadcasted_iota(jnp.int32, (Cp, Cp), 0)
    cc = lax.broadcasted_iota(jnp.int32, (Cp, Cp), 1)
    q_row = jnp.sum(jnp.where(rr == cc, q_col, 0.0), axis=0, keepdims=True)      # (1, Cp)

    outer = q_col * q_row                                        # (Cp, Cp), symmetric
    m = jnp.max(jnp.max(outer, axis=-1, keepdims=True), axis=0, keepdims=True)   # (1, 1)
    e = jnp.exp(outer - m)
    s = jnp.sum(jnp.sum(e, axis=-1, keepdims=True), axis=0, keepdims=True)       # (1, 1)
    qk = e * pl.reciprocal(s, approx=True)                       # softmax over all Cp*Cp
    # att = QK^T @ xl; QK is symmetric (outer product of q with itself followed by an
    # elementwise softmax), so it can be fed to the MXU directly at input dtype.
    att = jnp.dot(qk.astype(xdt), xl, preferred_element_type=jnp.float32)        # (Cp, HWp)
    o_ref[0, 0] = (xl * (att + 1.0).astype(xdt)).astype(o_ref.dtype)


def channel_attention(x, conv_q_w, conv_q_b, conv_l_w, conv_l_b):
    """ChannelAttention forward.

    x: (N, C, H, W).  conv_q_*: Conv1d(1,1,k) of the global branch (applied to both query
    and key, matching the PyTorch forward).  conv_l_*: Conv1d of the local branch.
    """
    N, C, H, W = x.shape
    assert C % 2 == 0, "channel count must be even (x.chunk(2, dim=1))"
    Cp = C // 2
    HW = H * W
    k = int(conv_q_w.shape[0])
    assert k % 2 == 1, "Kernel size must be odd"

    # Lane-dense last dim: pad HW up to a multiple of 128.  Zero padding is harmless —
    # GAP divides by the true HW and the padded tail is sliced off after the call.
    HWp = ((HW + 127) // 128) * 128

    # (N, C, H, W) -> (N, 2, C', HWp): the half-split lives on a leading axis, so the
    # kernel indexes whole tiles and the store stays lane-dense.
    x_blk = x.reshape(N, 2, Cp, HW)
    if HWp != HW:
        x_blk = jnp.pad(x_blk, ((0, 0), (0, 0), (0, 0), (0, HWp - HW)))

    wq = jnp.asarray(conv_q_w, jnp.float32).reshape(k)
    bq = jnp.asarray(conv_q_b, jnp.float32).reshape(1)
    wl = jnp.asarray(conv_l_w, jnp.float32).reshape(k)
    bl = jnp.asarray(conv_l_b, jnp.float32).reshape(1)

    # VMEM budget: double-buffered in + out blocks, f32 intermediates (att + epilogue
    # temps + (Cp,Cp) softmax scratch) and slack, capped below physical VMEM w/ headroom.
    blk_bytes = 2 * Cp * HWp * x.dtype.itemsize
    interm_bytes = 3 * Cp * HWp * 4 + 8 * Cp * Cp * 4
    needed = 4 * blk_bytes + interm_bytes + (4 << 20)
    try:
        cap = int(pltpu.get_tpu_info().vmem_capacity_bytes)
    except Exception:
        cap = 64 << 20                      # conservative (v7x per-TC VMEM)
    vmem_limit = int(min(max(needed, 16 << 20), int(cap * 0.85)))

    smem_spec = pl.BlockSpec(memory_space=pltpu.MemorySpace.SMEM)
    kern = functools.partial(_channel_attention_kernel, inv_hw=1.0 / float(HW))

    out = pl.pallas_call(
        kern,
        out_shape=jax.ShapeDtypeStruct((N, 2, Cp, HWp), x.dtype),
        grid_spec=pltpu.PrefetchScalarGridSpec(
            num_scalar_prefetch=0,
            grid=(N,),
            in_specs=[
                pl.BlockSpec((1, 2, Cp, HWp), lambda n: (n, 0, 0, 0)),
                smem_spec,   # conv_q weight taps
                smem_spec,   # conv_q bias
                smem_spec,   # conv_l weight taps
                smem_spec,   # conv_l bias
            ],
            out_specs=pl.BlockSpec((1, 2, Cp, HWp), lambda n: (n, 0, 0, 0)),
        ),
        compiler_params=pltpu.CompilerParams(
            dimension_semantics=("parallel",),
            vmem_limit_bytes=vmem_limit),
    )(x_blk, wq, bq, wl, bl)

    if HWp != HW:
        out = out[..., :HW]
    return out.reshape(N, C, H, W)


def _reference(x, conv_q_w, conv_q_b, conv_l_w, conv_l_b):
    # Pure-JAX reference mirroring the PyTorch ChannelAttention forward.
    N, C, H, W = x.shape
    Cp = C // 2
    k = conv_q_w.shape[0]
    pad = (k - 1) // 2
    xl, xr = x[:, :Cp], x[:, Cp:]

    def conv1d(v, w, b):                       # v: (N, Cp), "same" conv over channels
        vp = jnp.pad(v, ((0, 0), (pad, pad)))
        return jnp.stack([jnp.sum(vp[:, c:c + k] * w, axis=-1)
                          for c in range(Cp)], axis=-1) + b

    # Global branch (left half).  NOTE: PyTorch uses conv_q for BOTH query and key.
    gap_l = jnp.mean(xl, axis=(2, 3))                                  # (N, Cp)
    q = jax.nn.sigmoid(conv1d(gap_l, conv_q_w, conv_q_b))              # (N, Cp)
    qk = q[:, :, None] * q[:, None, :]                                 # (N, Cp, Cp)
    qk = jax.nn.softmax(qk.reshape(N, -1), axis=-1).reshape(N, Cp, Cp)
    att = jnp.einsum('nij,nihw->njhw', qk, xl,
                     precision=jax.lax.Precision.HIGHEST)
    x1 = xl * att
    # Local branch (right half).
    gap_r = jnp.mean(xr, axis=(2, 3))
    a = jax.nn.sigmoid(conv1d(gap_r, conv_l_w, conv_l_b))              # (N, Cp)
    x2 = xr * a[:, :, None, None] + xr
    return jnp.concatenate([x1, x2], axis=1) + x


if __name__ == "__main__":
    key = jax.random.PRNGKey(0)
    kx, kwq, kbq, kwl, kbl = jax.random.split(key, 5)

    N, C, H, W = 2, 16, 16, 16         # feature_map_size = 16 (GAP window = full map)
    kernel_size = 3                    # odd, as the module requires

    x = jax.random.normal(kx, (N, C, H, W), dtype=jnp.float32)
    conv_q_w = jax.random.normal(kwq, (kernel_size,), jnp.float32) * 0.5
    conv_q_b = jax.random.normal(kbq, (), jnp.float32) * 0.1
    conv_l_w = jax.random.normal(kwl, (kernel_size,), jnp.float32) * 0.5
    conv_l_b = jax.random.normal(kbl, (), jnp.float32) * 0.1

    out = channel_attention(x, conv_q_w, conv_q_b, conv_l_w, conv_l_b)
    out = jax.block_until_ready(out)

    ref = _reference(x, conv_q_w, conv_q_b, conv_l_w, conv_l_b)
    assert out.shape == (N, C, H, W)

    Cp = C // 2
    # Local branch: pure VPU/EUP f32 path -> tight tolerance.
    assert jnp.allclose(out[:, Cp:], ref[:, Cp:], atol=1e-4, rtol=1e-4), \
        "local-attention half mismatch"
    # Global branch: goes through the MXU; default TPU f32 matmul precision can differ
    # slightly from the HIGHEST-precision reference einsum.
    assert jnp.allclose(out[:, :Cp], ref[:, :Cp], atol=3e-2, rtol=3e-2), \
        "global-attention half mismatch"

    print("KERNEL_OK")
</pallas_src>

<mosaic_0001>
module attributes {stable_mosaic.version = 11 : i64} {
  func.func @_channel_attention_kernel(%arg0: i32, %arg1: memref<1x2x8x256xf32, #tpu.memory_space<vmem>>, %arg2: memref<3xf32, #tpu.memory_space<smem>>, %arg3: memref<1xf32, #tpu.memory_space<smem>>, %arg4: memref<3xf32, #tpu.memory_space<smem>>, %arg5: memref<1xf32, #tpu.memory_space<smem>>, %arg6: memref<1x2x8x256xf32, #tpu.memory_space<vmem>>) attributes {dimension_semantics = [#tpu.dimension_semantics<parallel>], iteration_bounds = array<i64: 2>, scalar_prefetch = 0 : i64, scratch_operands = 0 : i64, tpu.core_type = #tpu.core_type<tc>, window_params = [{transform_indices = @transform_0, window_bounds = array<i64: 1, 2, 8, 256>}, {transform_indices = @transform_1, window_bounds = array<i64: 3>}, {transform_indices = @transform_2, window_bounds = array<i64: 1>}, {transform_indices = @transform_3, window_bounds = array<i64: 3>}, {transform_indices = @transform_4, window_bounds = array<i64: 1>}, {transform_indices = @transform_5, window_bounds = array<i64: 1, 2, 8, 256>}]} {
    %c0 = arith.constant 0 : index
    %c0_0 = arith.constant 0 : index
    %c0_1 = arith.constant 0 : index
    %c0_2 = arith.constant 0 : index
    %0 = vector.load %arg1[%c0, %c0_0, %c0_1, %c0_2] : memref<1x2x8x256xf32, #tpu.memory_space<vmem>>, vector<1x1x8x256xf32>
    %1 = vector.shape_cast %0 : vector<1x1x8x256xf32> to vector<8x256xf32>
    %c0_3 = arith.constant 0 : index
    %c1 = arith.constant 1 : index
    %c0_4 = arith.constant 0 : index
    %c0_5 = arith.constant 0 : index
    %2 = vector.load %arg1[%c0_3, %c1, %c0_4, %c0_5] : memref<1x2x8x256xf32, #tpu.memory_space<vmem>>, vector<1x1x8x256xf32>
    %3 = vector.shape_cast %2 : vector<1x1x8x256xf32> to vector<8x256xf32>
    %cst = arith.constant dense<0.000000e+00> : vector<8xf32>
    %4 = vector.multi_reduction <add>, %1, %cst [1] : vector<8x256xf32> to vector<8xf32>
    %5 = vector.shape_cast %4 : vector<8xf32> to vector<8x1xf32>
    %cst_6 = arith.constant 3.906250e-03 : f32
    %6 = vector.broadcast %cst_6 : f32 to vector<8x1xf32>
    %7 = arith.mulf %5, %6 : vector<8x1xf32>
    %cst_7 = arith.constant dense<0.000000e+00> : vector<8xf32>
    %8 = vector.multi_reduction <add>, %3, %cst_7 [1] : vector<8x256xf32> to vector<8xf32>
    %9 = vector.shape_cast %8 : vector<8xf32> to vector<8x1xf32>
    %cst_8 = arith.constant 3.906250e-03 : f32
    %10 = vector.broadcast %cst_8 : f32 to vector<8x1xf32>
    %11 = arith.mulf %9, %10 : vector<8x1xf32>
    %12 = tpu.iota {dimensions = array<i32: 0>} : vector<8x1xi32>
    %cst_9 = arith.constant 0.000000e+00 : f32
    %13 = vector.broadcast %cst_9 : f32 to vector<8x1xf32>
    %c1_i32 = arith.constant 1 : i32
    %14 = tpu.dynamic_rotate %11 by %c1_i32 dim 0 : vector<8x1xf32>, i32 -> vector<8x1xf32>
    %c-1_i32 = arith.constant -1 : i32
    %15 = vector.broadcast %c-1_i32 : i32 to vector<8x1xi32>
    %16 = arith.addi %12, %15 : vector<8x1xi32>
    %c0_i32 = arith.constant 0 : i32
    %17 = vector.broadcast %c0_i32 : i32 to vector<8x1xi32>
    %18 = arith.cmpi sge, %16, %17 : vector<8x1xi32>
    %c-1_i32_10 = arith.constant -1 : i32
    %19 = vector.broadcast %c-1_i32_10 : i32 to vector<8x1xi32>
    %20 = arith.addi %12, %19 : vector<8x1xi32>
    %c8_i32 = arith.constant 8 : i32
    %21 = vector.broadcast %c8_i32 : i32 to vector<8x1xi32>
    %22 = arith.cmpi slt, %20, %21 : vector<8x1xi32>
    %23 = arith.andi %18, %22 : vector<8x1xi1>
    %c0_11 = arith.constant 0 : index
    %24 = memref.load %arg4[%c0_11] : memref<3xf32, #tpu.memory_space<smem>>
    %cst_12 = arith.constant 0.000000e+00 : f32
    %25 = vector.broadcast %cst_12 : f32 to vector<8x1xf32>
    %26 = arith.select %23, %14, %25 : vector<8x1xi1>, vector<8x1xf32>
    %27 = vector.broadcast %24 : f32 to vector<8x1xf32>
    %28 = arith.mulf %27, %26 : vector<8x1xf32>
    %29 = arith.addf %13, %28 : vector<8x1xf32>
    %c0_i32_13 = arith.constant 0 : i32
    %30 = vector.broadcast %c0_i32_13 : i32 to vector<8x1xi32>
    %31 = arith.addi %12, %30 : vector<8x1xi32>
    %c0_i32_14 = arith.constant 0 : i32
    %32 = vector.broadcast %c0_i32_14 : i32 to vector<8x1xi32>
    %33 = arith.cmpi sge, %31, %32 : vector<8x1xi32>
    %c0_i32_15 = arith.constant 0 : i32
    %34 = vector.broadcast %c0_i32_15 : i32 to vector<8x1xi32>
    %35 = arith.addi %12, %34 : vector<8x1xi32>
    %c8_i32_16 = arith.constant 8 : i32
    %36 = vector.broadcast %c8_i32_16 : i32 to vector<8x1xi32>
    %37 = arith.cmpi slt, %35, %36 : vector<8x1xi32>
    %38 = arith.andi %33, %37 : vector<8x1xi1>
    %c1_17 = arith.constant 1 : index
    %39 = memref.load %arg4[%c1_17] : memref<3xf32, #tpu.memory_space<smem>>
    %cst_18 = arith.constant 0.000000e+00 : f32
    %40 = vector.broadcast %cst_18 : f32 to vector<8x1xf32>
    %41 = arith.select %38, %11, %40 : vector<8x1xi1>, vector<8x1xf32>
    %42 = vector.broadcast %39 : f32 to vector<8x1xf32>
    %43 = arith.mulf %42, %41 : vector<8x1xf32>
    %44 = arith.addf %29, %43 : vector<8x1xf32>
    %c7_i32 = arith.constant 7 : i32
    %45 = tpu.dynamic_rotate %11 by %c7_i32 dim 0 : vector<8x1xf32>, i32 -> vector<8x1xf32>
    %c1_i32_19 = arith.constant 1 : i32
    %46 = vector.broadcast %c1_i32_19 : i32 to vector<8x1xi32>
    %47 = arith.addi %12, %46 : vector<8x1xi32>
    %c0_i32_20 = arith.constant 0 : i32
    %48 = vector.broadcast %c0_i32_20 : i32 to vector<8x1xi32>
    %49 = arith.cmpi sge, %47, %48 : vector<8x1xi32>
    %c1_i32_21 = arith.constant 1 : i32
    %50 = vector.broadcast %c1_i32_21 : i32 to vector<8x1xi32>
    %51 = arith.addi %12, %50 : vector<8x1xi32>
    %c8_i32_22 = arith.constant 8 : i32
    %52 = vector.broadcast %c8_i32_22 : i32 to vector<8x1xi32>
    %53 = arith.cmpi slt, %51, %52 : vector<8x1xi32>
    %54 = arith.andi %49, %53 : vector<8x1xi1>
    %c2 = arith.constant 2 : index
    %55 = memref.load %arg4[%c2] : memref<3xf32, #tpu.memory_space<smem>>
    %cst_23 = arith.constant 0.000000e+00 : f32
    %56 = vector.broadcast %cst_23 : f32 to vector<8x1xf32>
    %57 = arith.select %54, %45, %56 : vector<8x1xi1>, vector<8x1xf32>
    %58 = vector.broadcast %55 : f32 to vector<8x1xf32>
    %59 = arith.mulf %58, %57 : vector<8x1xf32>
    %60 = arith.addf %44, %59 : vector<8x1xf32>
    %c0_24 = arith.constant 0 : index
    %61 = memref.load %arg5[%c0_24] : memref<1xf32, #tpu.memory_space<smem>>
    %62 = vector.broadcast %61 : f32 to vector<8x1xf32>
    %63 = arith.addf %60, %62 : vector<8x1xf32>
    %64 = arith.negf %63 : vector<8x1xf32>
    %65 = math.exp %64 : vector<8x1xf32>
    %cst_25 = arith.constant 1.000000e+00 : f32
    %66 = vector.broadcast %cst_25 : f32 to vector<8x1xf32>
    %67 = arith.addf %66, %65 : vector<8x1xf32>
    %68 = arith.divf %66, %67 : vector<8x1xf32>
    %cst_26 = arith.constant 2.000000e+00 : f32
    %69 = vector.broadcast %cst_26 : f32 to vector<8x1xf32>
    %70 = arith.addf %68, %69 : vector<8x1xf32>
    %71 = vector.broadcast %70 : vector<8x1xf32> to vector<8x256xf32>
    %72 = arith.mulf %3, %71 : vector<8x256xf32>
    %c0_27 = arith.constant 0 : index
    %c1_28 = arith.constant 1 : index
    %c0_29 = arith.constant 0 : index
    %c0_30 = arith.constant 0 : index
    %73 = vector.load %arg6[%c0_27, %c1_28, %c0_29, %c0_30] : memref<1x2x8x256xf32, #tpu.memory_space<vmem>>, vector<1x1x8x256xf32>
    %74 = vector.shape_cast %73 : vector<1x1x8x256xf32> to vector<8x256xf32>
    %75 = vector.shape_cast %72 : vector<8x256xf32> to vector<1x1x8x256xf32>
    tpu.vector_store %arg6[%c0_27, %c1_28, %c0_29, %c0_30], %75 {strides = array<i32>} : memref<1x2x8x256xf32, #tpu.memory_space<vmem>>, vector<1x1x8x256xf32>,
    %cst_31 = arith.constant 0.000000e+00 : f32
    %76 = vector.broadcast %cst_31 : f32 to vector<8x1xf32>
    %c1_i32_32 = arith.constant 1 : i32
    %77 = tpu.dynamic_rotate %7 by %c1_i32_32 dim 0 : vector<8x1xf32>, i32 -> vector<8x1xf32>
    %c-1_i32_33 = arith.constant -1 : i32
    %78 = vector.broadcast %c-1_i32_33 : i32 to vector<8x1xi32>
    %79 = arith.addi %12, %78 : vector<8x1xi32>
    %c0_i32_34 = arith.constant 0 : i32
    %80 = vector.broadcast %c0_i32_34 : i32 to vector<8x1xi32>
    %81 = arith.cmpi sge, %79, %80 : vector<8x1xi32>
    %c-1_i32_35 = arith.constant -1 : i32
    %82 = vector.broadcast %c-1_i32_35 : i32 to vector<8x1xi32>
    %83 = arith.addi %12, %82 : vector<8x1xi32>
    %c8_i32_36 = arith.constant 8 : i32
    %84 = vector.broadcast %c8_i32_36 : i32 to vector<8x1xi32>
    %85 = arith.cmpi slt, %83, %84 : vector<8x1xi32>
    %86 = arith.andi %81, %85 : vector<8x1xi1>
    %c0_37 = arith.constant 0 : index
    %87 = memref.load %arg2[%c0_37] : memref<3xf32, #tpu.memory_space<smem>>
    %cst_38 = arith.constant 0.000000e+00 : f32
    %88 = vector.broadcast %cst_38 : f32 to vector<8x1xf32>
    %89 = arith.select %86, %77, %88 : vector<8x1xi1>, vector<8x1xf32>
    %90 = vector.broadcast %87 : f32 to vector<8x1xf32>
    %91 = arith.mulf %90, %89 : vector<8x1xf32>
    %92 = arith.addf %76, %91 : vector<8x1xf32>
    %c0_i32_39 = arith.constant 0 : i32
    %93 = vector.broadcast %c0_i32_39 : i32 to vector<8x1xi32>
    %94 = arith.addi %12, %93 : vector<8x1xi32>
    %c0_i32_40 = arith.constant 0 : i32
    %95 = vector.broadcast %c0_i32_40 : i32 to vector<8x1xi32>
    %96 = arith.cmpi sge, %94, %95 : vector<8x1xi32>
    %c0_i32_41 = arith.constant 0 : i32
    %97 = vector.broadcast %c0_i32_41 : i32 to vector<8x1xi32>
    %98 = arith.addi %12, %97 : vector<8x1xi32>
    %c8_i32_42 = arith.constant 8 : i32
    %99 = vector.broadcast %c8_i32_42 : i32 to vector<8x1xi32>
    %100 = arith.cmpi slt, %98, %99 : vector<8x1xi32>
    %101 = arith.andi %96, %100 : vector<8x1xi1>
    %c1_43 = arith.constant 1 : index
    %102 = memref.load %arg2[%c1_43] : memref<3xf32, #tpu.memory_space<smem>>
    %cst_44 = arith.constant 0.000000e+00 : f32
    %103 = vector.broadcast %cst_44 : f32 to vector<8x1xf32>
    %104 = arith.select %101, %7, %103 : vector<8x1xi1>, vector<8x1xf32>
    %105 = vector.broadcast %102 : f32 to vector<8x1xf32>
    %106 = arith.mulf %105, %104 : vector<8x1xf32>
    %107 = arith.addf %92, %106 : vector<8x1xf32>
    %c7_i32_45 = arith.constant 7 : i32
    %108 = tpu.dynamic_rotate %7 by %c7_i32_45 dim 0 : vector<8x1xf32>, i32 -> vector<8x1xf32>
    %c1_i32_46 = arith.constant 1 : i32
    %109 = vector.broadcast %c1_i32_46 : i32 to vector<8x1xi32>
    %110 = arith.addi %12, %109 : vector<8x1xi32>
    %c0_i32_47 = arith.constant 0 : i32
    %111 = vector.broadcast %c0_i32_47 : i32 to vector<8x1xi32>
    %112 = arith.cmpi sge, %110, %111 : vector<8x1xi32>
    %c1_i32_48 = arith.constant 1 : i32
    %113 = vector.broadcast %c1_i32_48 : i32 to vector<8x1xi32>
    %114 = arith.addi %12, %113 : vector<8x1xi32>
    %c8_i32_49 = arith.constant 8 : i32
    %115 = vector.broadcast %c8_i32_49 : i32 to vector<8x1xi32>
    %116 = arith.cmpi slt, %114, %115 : vector<8x1xi32>
    %117 = arith.andi %112, %116 : vector<8x1xi1>
    %c2_50 = arith.constant 2 : index
    %118 = memref.load %arg2[%c2_50] : memref<3xf32, #tpu.memory_space<smem>>
    %cst_51 = arith.constant 0.000000e+00 : f32
    %119 = vector.broadcast %cst_51 : f32 to vector<8x1xf32>
    %120 = arith.select %117, %108, %119 : vector<8x1xi1>, vector<8x1xf32>
    %121 = vector.broadcast %118 : f32 to vector<8x1xf32>
    %122 = arith.mulf %121, %120 : vector<8x1xf32>
    %123 = arith.addf %107, %122 : vector<8x1xf32>
    %c0_52 = arith.constant 0 : index
    %124 = memref.load %arg3[%c0_52] : memref<1xf32, #tpu.memory_space<smem>>
    %125 = vector.broadcast %124 : f32 to vector<8x1xf32>
    %126 = arith.addf %123, %125 : vector<8x1xf32>
    %127 = arith.negf %126 : vector<8x1xf32>
    %128 = math.exp %127 : vector<8x1xf32>
    %cst_53 = arith.constant 1.000000e+00 : f32
    %129 = vector.broadcast %cst_53 : f32 to vector<8x1xf32>
    %130 = arith.addf %129, %128 : vector<8x1xf32>
    %131 = arith.divf %129, %130 : vector<8x1xf32>
    %132 = tpu.iota {dimensions = array<i32: 0>} : vector<8x8xi32>
    %133 = tpu.iota {dimensions = array<i32: 1>} : vector<8x8xi32>
    %134 = arith.cmpi eq, %132, %133 : vector<8x8xi32>
    %cst_54 = arith.constant 0.000000e+00 : f32
    %135 = vector.shape_cast %131 : vector<8x1xf32> to vector<8x1xf32>
    %136 = vector.broadcast %135 : vector<8x1xf32> to vector<8x8xf32>
    %137 = vector.broadcast %cst_54 : f32 to vector<8x8xf32>
    %138 = arith.select %134, %136, %137 : vector<8x8xi1>, vector<8x8xf32>
    %cst_55 = arith.constant dense<0.000000e+00> : vector<8xf32>
    %139 = vector.multi_reduction <add>, %138, %cst_55 [0] : vector<8x8xf32> to vector<8xf32>
    %140 = vector.shape_cast %139 : vector<8xf32> to vector<1x8xf32>
    %141 = vector.broadcast %131 : vector<8x1xf32> to vector<8x8xf32>
    %142 = vector.broadcast %140 : vector<1x8xf32> to vector<8x8xf32>
    %143 = arith.mulf %141, %142 : vector<8x8xf32>
    %cst_56 = arith.constant dense<0xFF800000> : vector<8xf32>
    %144 = vector.multi_reduction <maximumf>, %143, %cst_56 [1] : vector<8x8xf32> to vector<8xf32>
    %145 = vector.shape_cast %144 : vector<8xf32> to vector<8x1xf32>
    %cst_57 = arith.constant dense<0xFF800000> : vector<1xf32>
    %146 = vector.multi_reduction <maximumf>, %145, %cst_57 [0] : vector<8x1xf32> to vector<1xf32>
    %147 = vector.shape_cast %146 : vector<1xf32> to vector<1x1xf32>
    %148 = vector.broadcast %147 : vector<1x1xf32> to vector<8x8xf32>
    %149 = arith.subf %143, %148 : vector<8x8xf32>
    %150 = math.exp %149 : vector<8x8xf32>
    %cst_58 = arith.constant dense<0.000000e+00> : vector<8xf32>
    %151 = vector.multi_reduction <add>, %150, %cst_58 [1] : vector<8x8xf32> to vector<8xf32>
    %152 = vector.shape_cast %151 : vector<8xf32> to vector<8x1xf32>
    %cst_59 = arith.constant dense<0.000000e+00> : vector<1xf32>
    %153 = vector.multi_reduction <add>, %152, %cst_59 [0] : vector<8x1xf32> to vector<1xf32>
    %154 = vector.shape_cast %153 : vector<1xf32> to vector<1x1xf32>
    %155 = tpu.reciprocal %154 {approx = true} : vector<1x1xf32> -> vector<1x1xf32>
    %156 = vector.broadcast %155 : vector<1x1xf32> to vector<8x8xf32>
    %157 = arith.mulf %150, %156 : vector<8x8xf32>
    %cst_60 = arith.constant dense<0.000000e+00> : vector<8x256xf32>
    %158 = tpu.matmul %157, %1, %cst_60 {dimension_numbers = #tpu.dot_dimension_numbers<[1], [0], [0], [1], [0, 0, 1, 1], [], []>} : vector<8x8xf32>, vector<8x256xf32>, vector<8x256xf32> -> vector<8x256xf32>
    %cst_61 = arith.constant 1.000000e+00 : f32
    %159 = vector.broadcast %cst_61 : f32 to vector<8x256xf32>
    %160 = arith.addf %158, %159 : vector<8x256xf32>
    %161 = arith.mulf %1, %160 : vector<8x256xf32>
    %c0_62 = arith.constant 0 : index
    %c0_63 = arith.constant 0 : index
    %c0_64 = arith.constant 0 : index
    %c0_65 = arith.constant 0 : index
    %162 = vector.load %arg6[%c0_62, %c0_63, %c0_64, %c0_65] : memref<1x2x8x256xf32, #tpu.memory_space<vmem>>, vector<1x1x8x256xf32>
    %163 = vector.shape_cast %162 : vector<1x1x8x256xf32> to vector<8x256xf32>
    %164 = vector.shape_cast %161 : vector<8x256xf32> to vector<1x1x8x256xf32>
    tpu.vector_store %arg6[%c0_62, %c0_63, %c0_64, %c0_65], %164 {strides = array<i32>} : memref<1x2x8x256xf32, #tpu.memory_space<vmem>>, vector<1x1x8x256xf32>,
    return
  }
  func.func @transform_0(%arg0: i32) -> (i32, i32, i32, i32) {
    %c0_i32 = arith.constant 0 : i32
    %c0_i32_0 = arith.constant 0 : i32
    %c0_i32_1 = arith.constant 0 : i32
    %c0_i32_2 = arith.constant 0 : i32
    return %arg0, %c0_i32, %c0_i32_0, %c0_i32_1 : i32, i32, i32, i32
  }
  func.func @transform_1(%arg0: i32) -> i32 {
    %c0_i32 = arith.constant 0 : i32
    %c0_i32_0 = arith.constant 0 : i32
    return %c0_i32 : i32
  }
  func.func @transform_2(%arg0: i32) -> i32 {
    %c0_i32 = arith.constant 0 : i32
    %c0_i32_0 = arith.constant 0 : i32
    return %c0_i32 : i32
  }
  func.func @transform_3(%arg0: i32) -> i32 {
    %c0_i32 = arith.constant 0 : i32
    %c0_i32_0 = arith.constant 0 : i32
    return %c0_i32 : i32
  }
  func.func @transform_4(%arg0: i32) -> i32 {
    %c0_i32 = arith.constant 0 : i32
    %c0_i32_0 = arith.constant 0 : i32
    return %c0_i32 : i32
  }
  func.func @transform_5(%arg0: i32) -> (i32, i32, i32, i32) {
    %c0_i32 = arith.constant 0 : i32
    %c0_i32_0 = arith.constant 0 : i32
    %c0_i32_1 = arith.constant 0 : i32
    %c0_i32_2 = arith.constant 0 : i32
    return %arg0, %c0_i32, %c0_i32_0, %c0_i32_1 : i32, i32, i32, i32
  }
}

</mosaic_0001>

<bundles_post_ra>
// kernel: tpu_custom_call.1
= control target key start
LH: loop header
LB: loop body
LE: loop exit
PB: predicated region body
PF: predicated region fallthrough
CT: control target
= control target key end

     0   :  { %s1081_s0 = inlined_call_operand.hbm [shape: f32[2,2,8,256], index: 0, kind: input, shape index: {}]   ;;  %s1082_s1 = inlined_call_operand.vmem [shape: f32[3], index: 1, kind: input, shape index: {}]   ;;  %s1083_s2 = inlined_call_operand.<no memory space> [shape: f32[1], index: 2, kind: input, shape index: {}]   ;;  %s1084_s3 = inlined_call_operand.vmem [shape: f32[3], index: 3, kind: input, shape index: {}]   ;;  %s1085_s4 = inlined_call_operand.<no memory space> [shape: f32[1], index: 4, kind: input, shape index: {}]   ;;  %s1086_s5 = inlined_call_operand.hbm [shape: f32[2,2,8,256], index: 5, kind: output, shape index: {}]  }
   0x1   :  { %1087 = sst [smem:[#allocation16_spill]] %s1082_s1 }
   0x2   :  { %10 = sst [smem:[#allocation2]] %s1083_s2 }
   0x3   :  { %11 = sst [smem:[#allocation3]] %s1085_s4 }
   0x4   :  { %12 = vsyncpa [#allocation5], 0 }
   0x5   :  { %14 = vsyncpa [#allocation5 + $0x1], 0 }
   0x6   :  { %15 = vsyncpa [#allocation7], 0 }
   0x7   :  { %16 = vsyncpa [#allocation10], 0 }
   0x8   :  { %17 = vsyncpa [#allocation6], 0 }
   0x9   :  { %19 = vsyncpa [#allocation6 + $0x1], 0  ;;  %s885_s22 = smov 0   ;;  %s887_s23 = smov 0  }
   0xa   :  { %s889_s24 = smov 0   ;;  %s891_s25 = smov 0  }
   0xb LB: > { %s906_s2 = sadd.s32 4294967295, %s840_s25   ;;  %s588_s4 = sadd.s32 4294967294, %s840_s25   ;;  %s840_s25 = sphi %s891_s25, %s1099_s25   ;;  %s836_s24 = sphi %s889_s24, %s1098_s24   ;;  %s832_s23 = sphi %s887_s23, %s1097_s23   ;;  %s828_s22 = sphi %s885_s22, %s1096_s22  }
   0xc   : > { %s910_s26 = sadd.s32 1, %s840_s25   ;;  %s32_s27 = sadd.s32 1, %s836_s24 }
   0xd   : > { %s29_s28 = ssub.s32 %s840_s25, %s910_s26  ;;  %p39_p0 = scmp.ne.s32.totalorder %s836_s24, %s832_s23 }
   0xe   : > { %p30_p1 = scmp.eq.s32.totalorder %s29_s28, 0  ;;  %p40_p2 = scmp.eq.s32.totalorder %s840_s25, 0 }
   0xf   : > { %p45_p3 = scmp.ne.s32.totalorder %s832_s23, %s828_s22  ;;  %p46_p4 = scmp.eq.s32.totalorder %s906_s2, 0 }
  0x10   : > { %s922_s29 = scalar_select %p30_p1, %s836_s24, %s32_s27  }
  0x11   : > { %p924_p5 = por %p40_p2, %p39_p0  ;;  %p930_p6 = por %p46_p4, %p45_p3 }
  0x12   : > { %p153_p7 = scmp.eq.s32.totalorder %s906_s2, 1  ;;  %p159_p8 = scmp.eq.s32.totalorder %s588_s4, 1 }
  0x13   : > { %p589_p9 = scmp.ge.s32.totalorder %s840_s25, 1  ;;  %p166_p10 = scmp.lt.s32.totalorder %s840_s25, 3 }
  0x14   : > { %p937_p11 = por %p153_p7, %p39_p0  ;;  %p941_p12 = por %p159_p8, %p45_p3 }
  0x15   : > { %p945_p13 = pnand %p589_p9, %p166_p10  ;;  %s1093_s1 = sld [smem:[#allocation16_spill]] }
  0x16   : > { %p649_p2 = scmp.lt.s32.totalorder %s840_s25, 2  ;;  %s191_s15 = sshll.u32 %s1084_s3, 4  ;;  %s192_s15 = int_to_ptr.vmem [resolvable:$true] %s191_s15 }
  0x17   : > { %p632_p1 = pneg %p945_p13  ;;  %s842_s17 = smov [#allocation8]  }
  0x18   : > { %p963_p7 = pnand %p649_p2, %p924_p5  ;;  %s205_s18 = sand.u32 1, %s836_s24  }
  0x19   : > { %p633_p3 = pnand %p632_p1, %p46_p4  ;;  %s843_s19 = smov [#allocation9]  }
  0x1a   : > { %s593_s20 = sshll.u32 %s205_s18, 5  ;;  %s618_s21 = sshll.u32 %s840_s25, 5 }
  0x1b   : > { %s178_s12 = sshll.u32 %s1093_s1, 4  ;;  %s214_s28 = scalar_lea.hbm %s1081_s0, %s618_s21  ;;  %s179_s12 = int_to_ptr.vmem [resolvable:$true] %s178_s12 }
  0x1c   : > { %635 = dma.vmem_to_smem (!%p633_p3), %s179_s12, 16, %s842_s17, [#allocation7]  }
  0x1d   : > { %638 = dma.vmem_to_smem (!%p633_p3), %s192_s15, 16, %s843_s19, [#allocation10]  }
  0x1e   : > { %s209_s10 = scalar_lea.vmem [#allocation4], %s593_s20  ;;  %s215_s30 = sshll.u32 %s214_s28, 4  ;;  %s216_s30 = int_to_ptr.hbm [resolvable:$true] %s215_s30 }
  0x1f   : > { %s217_s11 = sshll.u32 %s209_s10, 4  ;;  %s206_s13 = scalar_lea.sflag [#allocation5], %s205_s18  ;;  %s218_s11 = int_to_ptr.vmem [resolvable:$true] %s217_s11 }
  0x20   : > { %s736_s14 = sshra.s32 %s216_s30, 4  ;;  %p740_p8 = pneg %p963_p7  ;;  %s737_s14 = int_to_ptr.hbm [resolvable:$true] %s736_s14 }
  0x21   : > { %s738_s1 = scalar_lea.hbm %s737_s14, 32  ;;  %s743_s17 = scalar_lea.hbm %s1081_s0, 64 }
  0x22   : > { %p739_p5 = scmp.ne.s32.totalorder %s737_s14, %s738_s1  ;;  %p744_p1 = scmp.lt.s32.totalorder %s737_s14, %s1081_s0 }
  0x23   : > { %p745_p2 = scmp.lt.s32.totalorder %s743_s17, %s738_s1 }
  0x24   : > { %p741_p9 = pnand %p740_p8, %p739_p5 }
  0x25   : > { %p746_p3 = por %p745_p2, %p744_p1 }
  0x26   : > { %p742_p10 = pneg %p741_p9 }
  0x28   : > { %p747_p0 = pnand %p746_p3, %p742_p10 }
  0x2a   : > { %750 = shalt.err (!%p747_p0)
}
  0x2b   : > { %s844_s18 = smov 256   ;;  %s845_s20 = smov 16  }
  0x2c   : > { %642 = dma.hbm_to_vmem [thread:$0]  (!%p963_p7), %s216_s30, 512, %s218_s11, %s206_s13, %s844_s18, %s844_s18, %s845_s20  }
  0x2d   : > { %229 = sbr.rel (%p945_p13) target bundleno = 761 (0x2f9), region = 40  ;;  %s985_s4 = sand.u32 (!%p945_p13), 1, %s832_s23  }
  0x2e   : > { %s597_s27 = sshll.u32 (!%p945_p13), %s985_s4, 5  ;;  %s232_s1 = scalar_lea.sflag (!%p945_p13), [#allocation5], %s985_s4 }
  0x2f   : > { %s991_s28 = scalar_lea.vmem (!%p945_p13), [#allocation4], %s597_s27 }
  0x32   : > { %811 = dma.done.wait (%p930_p6), %s232_s1, 512  }
  0x33   : > { %813 = vsyncadd (%p930_p6), %s232_s1, 4294966784 }
  0x34   : > { %815 = dma.done.wait (%p46_p4), [#allocation7], 16  }
  0x35   : > { %817 = vsyncadd (%p46_p4), [#allocation7], 4294967280 }
  0x36   : > { %819 = dma.done.wait (%p46_p4), [#allocation10], 16  }
  0x37   : > { %821 = vsyncadd (%p46_p4), [#allocation10], 4294967280 }
  0x38   : > { %251 = sfence }
  0x39   : > { %v1006_v0 = vld [vmem:[%s991_s28] sm:$0xff]  ;;  %v1009_v1 = vld [vmem:[%s991_s28 + $0x8] sm:$0xff]  ;;  %v287_v3 = vlaneseq  ;;  %s351_s6 = sld [smem:[#allocation8]]  ;;  %v846_v5 = vmov 0   ;;  %vm398_vm7 = vcmask 64512   ;;  %v1028_v49 = vld [vmem:[%s991_s28 + $0x10] sm:$0xff] }
  0x3a   : > { %v279_v2 = vadd.f32 %v1009_v1, %v1006_v0  ;;  %448 = vmatpush.msra.mxu0 %v1006_v0  ;;  %468 = vmatpush.msra.mxu1 %v1009_v1  ;;  %s608_s9 = sld [smem:[#allocation8 + $0x1]]  ;;  %v1031_v50 = vld [vmem:[%s991_s28 + $0x18] sm:$0xff]  ;;  %s273_s12 = scalar_lea.vmem [#allocation11], %s597_s27 }
  0x3b   : > { %v288_v4 = vshrl.u32 %v287_v3, 7  ;;  %692 = vset.pattern.permute.xlu0 %v846_v5  ;;  %693 = vset.pattern.permute.xlu2 %v846_v5  ;;  %s609_s16 = sld [smem:[#allocation8 + $0x2]]  ;;  %v390_v37 = vand.u32 127, %v287_v3  ;;  %v283_v51 = vadd.f32 %v1031_v50, %v1028_v49  ;;  %s619_s15 = sshll.u32 %s906_s2, 5 }
  0x3c   : > { %280 = vadd.xlane.f32.xlu0 %v279_v2  ;;  %s367_s10 = sld [smem:[#allocation2]]  ;;  %s489_s21 = scalar_lea.hbm %s1086_s5, %s619_s15 }
  0x3d   : > { %v1015_v6 = vadd.s32 4294967295, %v288_v4  ;;  %v1017_v7 = vadd.s32 1, %v288_v4  ;;  %vm391_vm6 = vcmp.eq.s32.totalorder %v288_v4, %v390_v37  ;;  %284 = vadd.xlane.f32.xlu2 %v283_v51  ;;  %s603_s11 = sld [smem:[#allocation9 + $0x1]]  ;;  %s490_s18 = sshll.u32 %s273_s12, 4  ;;  %s491_s18 = int_to_ptr.vmem [resolvable:$true] %s490_s18 }
  0x3e   : > { %s294_s30 = sld [smem:[#allocation9]]  ;;  %s492_s20 = sshll.u32 %s489_s21, 4  ;;  %s493_s20 = int_to_ptr.hbm [resolvable:$true] %s492_s20 }
  0x3f   : > { %vm291_vm0 = vcmp.ge.s32.totalorder %v1015_v6, 0  ;;  %vm310_vm1 = vcmp.lt.s32.totalorder %v1017_v7, 8  ;;  %v353_v10 = vstv %s351_s6  ;;  %s604_s13 = sld [smem:[#allocation9 + $0x2]]  ;;  %s478_s2 = scalar_lea.sflag [#allocation6], %s985_s4 }
  0x40   : > { %v358_v11 = vstv %s608_s9  ;;  %s317_s14 = sld [smem:[#allocation3]]  ;;  %s780_s27 = sshra.s32 %s493_s20, 4  ;;  %s781_s27 = int_to_ptr.hbm [resolvable:$true] %s780_s27 }
  0x41   : > { %v364_v14 = vstv %s609_s16  ;;  %s782_s1 = scalar_lea.hbm %s781_s27, 32  ;;  %s786_s9 = scalar_lea.hbm %s1086_s5, 64 }
  0x42   : > { %v368_v21 = vstv %s367_s10  ;;  %p783_p4 = scmp.ne.s32.totalorder %s781_s27, %s782_s1  ;;  %p787_p0 = scmp.lt.s32.totalorder %s781_s27, %s1086_s5 }
  0x43   : > { %v304_v2 = vstv %s603_s11  ;;  %p788_p7 = scmp.lt.s32.totalorder %s786_s9, %s782_s1 }
  0x44   : > { %v296_v4 = vstv %s294_s30  ;;  %p784_p6 = pnand %p783_p4, %p937_p11 }
  0x45   : > { %v314_v5 = vstv %s604_s13  ;;  %p789_p5 = por %p788_p7, %p787_p0 }
  0x46   : > { %p785_p13 = pneg %p784_p6 }
  0x48   : > { %p790_p8 = pnand %p789_p5, %p785_p13 }
  0xaf   : > { %v281_v8 = vpop.xlane.xlu0 %280 }
  0xb0   : > { %v282_v9 = vmul.f32 0.00390625, %v281_v8  ;;  %v285_v63 = vpop.xlane.xlu2 %284 }
  0xb1   : > { %v286_v3 = vmul.f32 0.00390625, %v285_v63 }
  0xb2   : > { %v350_v12 = vrot.slane %v282_v9, 7  ;;  %v361_v13 = vrot.slane %v282_v9, 1  ;;  %v359_v18 = vmul.f32 %v358_v11, %v282_v9 }
  0xb3   : > { %v289_v8 = vrot.slane %v286_v3, 7  ;;  %v307_v9 = vrot.slane %v286_v3, 1 }
  0xb4   : > { %v352_v15 = vsel %vm291_vm0, %v350_v12, 0.0  ;;  %v363_v16 = vsel %vm310_vm1, %v361_v13, 0.0 }
  0xb5   : > { %v354_v17 = vmul.f32 %v353_v10, %v352_v15  ;;  %v365_v20 = vmul.f32 %v364_v14, %v363_v16  ;;  %v305_v10 = vmul.f32 %v304_v2, %v286_v3  ;;  %v295_v11 = vsel %vm291_vm0, %v289_v8, 0.0 }
  0xb6   : > { %v313_v12 = vsel %vm310_vm1, %v307_v9, 0.0  ;;  %v297_v13 = vmul.f32 %v296_v4, %v295_v11  ;;  %v318_v16 = vstv %s317_s14 }
  0xb7   : > { %v360_v19 = vadd.f32 %v359_v18, %v354_v17  ;;  %v315_v14 = vmul.f32 %v314_v5, %v313_v12 }
  0xb8   : > { %v306_v15 = vadd.f32 %v305_v10, %v297_v13 }
  0xb9   : > { %v366_v22 = vadd.f32 %v365_v20, %v360_v19 }
  0xba   : > { %v316_v17 = vadd.f32 %v315_v14, %v306_v15 }
  0xbb   : > { %v369_v23 = vadd.f32 %v368_v21, %v366_v22 }
  0xbc   : > { %v319_v18 = vadd.f32 %v318_v16, %v316_v17 }
  0xbd   : > { %v610_v24 = vmul.f32 -1.442695, %v369_v23 }
  0xbe   : > { %v605_v19 = vmul.f32 -1.442695, %v319_v18 }
  0xbf   : > { %694 = vpow2.f32 %v610_v24 }
  0xc5   : > { %v695_v25 = vpop.eup %694 }
  0xc6   : > { %v373_v26 = vadd.f32 1.0, %v695_v25 }
  0xc8   : > { %696 = vrcp.f32 %v373_v26  ;;  %v385_v30 = vand.u32 2147483648, %v373_v26  ;;  %v383_v32 = vand.u32 2147483647, %v373_v26  ;;  %vm379_vm3 = vweird.f32 %v373_v26 }
  0xca   : > { %v386_v34 = vor.u32 1.1754944e-38, %v385_v30  ;;  %vm384_vm5 = vcmp.eq.f32.partialorder %v383_v32, 8.507059e+37 }
  0xce   : > { %v697_v27 = vpop.eup %696 }
  0xcf   : > { %v375_v28 = vmul.f32 %v697_v27, %v373_v26  ;;  %vm380_vm2 = vweird.f32 %v697_v27 }
  0xd0   : > { %vm381_vm4 = vmor %vm379_vm3, %vm380_vm2 }
  0xd1   : > { %v376_v29 = vsub.f32 1.0, %v375_v28 }
  0xd3   : > { %v377_v31 = vmul.f32 %v697_v27, %v376_v29 }
  0xd5   : > { %v378_v33 = vadd.f32 %v697_v27, %v377_v31 }
  0xd7   : > { %v382_v35 = vsel %vm381_vm4, %v697_v27, %v378_v33 }
  0xd8   : > { %v387_v36 = vsel %vm384_vm5, %v386_v34, %v382_v35 }
  0xd9   : > { %394 = vperm.xlu0 %692, %v387_v36  }
 0x14b   : > { %v395_v38 = vpop.permute.xlu0 %394 }
 0x14c   : > { %v397_v39 = vsel %vm391_vm6, %v395_v38, 0.0 }
 0x14d   : > { %v399_v40 = vsel %vm398_vm7, %v397_v39, 0.0 }
 0x14e   : > { %v400_v41 = vrot.slane %v399_v40, 4 }
 0x150   : > { %v401_v42 = vadd.f32 %v400_v41, %v399_v40 }
 0x152   : > { %v402_v43 = vrot.slane %v401_v42, 2 }
 0x154   : > { %v403_v44 = vadd.f32 %v402_v43, %v401_v42 }
 0x156   : > { %v404_v45 = vrot.slane %v403_v44, 1 }
 0x158   : > { %v405_v46 = vadd.f32 %v404_v45, %v403_v44 }
 0x15a   : > { %v406_v47 = vmul.f32 %v405_v46, %v395_v38 }
 0x15c   : > { %v407_v48 = vsel %vm398_vm7, %v406_v47, -inf }
 0x15d   : > { %408 = vmax.xlane.f32.xlu1 %v407_v48 }
 0x1d0   : > { %v409_v52 = vpop.xlane.xlu1 %408 }
 0x1d1   : > { %v410_v53 = vrot.slane %v409_v52, 4 }
 0x1d3   : > { %v411_v54 = vmax.f32 %v409_v52, %v410_v53 }
 0x1d5   : > { %v412_v55 = vrot.slane %v411_v54, 2 }
 0x1d7   : > { %v413_v56 = vmax.f32 %v411_v54, %v412_v55 }
 0x1d9   : > { %v414_v57 = vrot.slane %v413_v56, 1 }
 0x1db   : > { %v415_v58 = vmax.f32 %v413_v56, %v414_v57 }
 0x1dd   : > { %v416_v59 = vsub.f32 %v406_v47, %v415_v58 }
 0x1df   : > { %v417_v60 = vmul.f32 1.442695, %v416_v59 }
 0x1e1   : > { %698 = vpow2.f32 %v417_v60 }
 0x1e2   : > { %700 = vpow2.f32 %v605_v19 }
 0x1e7   : > { %v699_v61 = vpop.eup %698 }
 0x1e8   : > { %v419_v62 = vsel %vm398_vm7, %v699_v61, 0.0  ;;  %v701_v20 = vpop.eup %700 }
 0x1e9   : > { %420 = vadd.xlane.f32.xlu1 %v419_v62  ;;  %v323_v21 = vadd.f32 1.0, %v701_v20 }
 0x1eb   : > { %702 = vrcp.f32 %v323_v21  ;;  %v335_v24 = vand.u32 2147483648, %v323_v21  ;;  %vm329_vm8 = vweird.f32 %v323_v21  ;;  %v333_v6 = vand.u32 2147483647, %v323_v21 }
 0x1ed   : > { %v336_v26 = vor.u32 1.1754944e-38, %v335_v24  ;;  %vm334_vm11 = vcmp.eq.f32.partialorder %v333_v6, 8.507059e+37 }
 0x1f1   : > { %v703_v22 = vpop.eup %702 }
 0x1f2   : > { %v325_v23 = vmul.f32 %v703_v22, %v323_v21  ;;  %vm330_vm9 = vweird.f32 %v703_v22 }
 0x1f3   : > { %vm331_vm10 = vmor %vm329_vm8, %vm330_vm9 }
 0x1f4   : > { %v326_v25 = vsub.f32 1.0, %v325_v23 }
 0x1f6   : > { %v327_v7 = vmul.f32 %v703_v22, %v326_v25 }
 0x1f8   : > { %v328_v27 = vadd.f32 %v703_v22, %v327_v7 }
 0x1fa   : > { %v332_v28 = vsel %vm331_vm10, %v703_v22, %v328_v27 }
 0x1fb   : > { %v337_v30 = vsel %vm334_vm11, %v336_v26, %v332_v28 }
 0x1fc   : > { %v339_v32 = vadd.f32 2.0, %v337_v30 }
 0x1fe   : > { %342 = vperm.xlu2 %693, %v339_v32  }
 0x258   : > { %v343_v40 = vpop.permute.xlu2 %342 }
 0x259   : > { %v345_v41 = vmul.f32 %v1028_v49, %v343_v40  ;;  %v346_v42 = vmul.f32 %v1031_v50, %v343_v40 }
 0x25b   : > { %606 = vst [vmem:[%s273_s12 + $0x10] sm:$0xff] %v345_v41 }
 0x25c   : > { %v421_v29 = vpop.xlane.xlu1 %420  ;;  %607 = vst [vmem:[%s273_s12 + $0x18] sm:$0xff] %v346_v42 }
 0x25d   : > { %v422_v31 = vrot.slane %v421_v29, 4 }
 0x25f   : > { %v423_v33 = vadd.f32 %v422_v31, %v421_v29 }
 0x261   : > { %v424_v34 = vrot.slane %v423_v33, 2 }
 0x263   : > { %v425_v35 = vadd.f32 %v424_v34, %v423_v33 }
 0x265   : > { %v426_v36 = vrot.slane %v425_v35, 1 }
 0x267   : > { %v427_v37 = vadd.f32 %v426_v36, %v425_v35 }
 0x269   : > { %704 = vrcp.f32 %v427_v37 }
 0x26f   : > { %v705_v38 = vpop.eup %704 }
 0x270   : > { %v429_v39 = vmul.f32 %v705_v38, %v699_v61 }
 0x272   : > { %611 = vmatmul.msk.f32.vlgmr.msra.gmra.mxu0 %vm398_vm7, %v429_v39  ;;  %612 = vmatmul.msk.f32.vlgmr.msra.gmra.mxu1 %vm398_vm7, %v429_v39 }
 0x2ef   : > { %v450_v43 = vpop.f32.mrf.mxu0  ;;  %v470_v44 = vpop.f32.mrf.mxu1 }
 0x2f0   : > { %v451_v45 = vadd.f32 1.0, %v450_v43  ;;  %v471_v46 = vadd.f32 1.0, %v470_v44 }
 0x2f2   : > { %v473_v47 = vmul.f32 %v451_v45, %v1006_v0  ;;  %v474_v48 = vmul.f32 %v471_v46, %v1009_v1 }
 0x2f4   : > { %475 = vst [vmem:[%s273_s12] sm:$0xff] %v473_v47 }
 0x2f5   : > { %476 = vst [vmem:[%s273_s12 + $0x8] sm:$0xff] %v474_v48 }
 0x2f6   : > { %793 = shalt.err (!%p790_p8)
}
 0x2f7   : > { %s847_s4 = smov 256   ;;  %s848_s11 = smov 16  }
 0x2f8   : > { %630 = dma.vmem_to_hbm [thread:$0]  (%p937_p11), %s491_s18, 512, %s493_s20, %s478_s2, %s847_s4, %s847_s4, %s848_s11  }
 0x2f9 PF: > { %s507_s30 = sand.u32 1, %s828_s22   ;;  %p1095_p9 = scmp.ge.s32.totalorder %s840_s25, 2 }
 0x2fa   : > { %s508_s13 = scalar_lea.sflag [#allocation6], %s507_s30 }
 0x2fb   : > { %p644_p10 = pnand %p1095_p9, %p941_p12 }
 0x2fd   : > { %p645_p1 = pneg %p644_p10 }
 0x2ff   : > { %823 = dma.done.wait (%p645_p1), %s508_s13, 512  }
 0x300   : > { %825 = vsyncadd (%p645_p1), %s508_s13, 4294966784  ;;  %p22_p2 = scmp.ge.s32.totalorder %s910_s26, 4   ;;  %s1096_s22 = smov %s832_s23 }
 0x301   : > { %s1097_s23 = smov %s836_s24  ;;  %s1098_s24 = smov %s922_s29 }
 0x302   : > { %s1099_s25 = smov %s910_s26  ;;  %24 = sbr.rel (!%p22_p2) target bundleno = 11 (0xb), region = 96 }
 0x307   :  { %514 = vsyncpa [#allocation5], 1 }
 0x308   :  { %516 = vsyncpa [#allocation5 + $0x1], 1 }
 0x309   :  { %517 = vsyncpa [#allocation6], 1 }
 0x30a   :  { %519 = vsyncpa [#allocation6 + $0x1], 1 }
 0x30b   :  { %520 = vsyncpa [#allocation7], 1 }
 0x30c   :  { %522 = vsyncpa [#allocation7 + $0x1], 1 }
 0x30d   :  { %523 = vsyncpa [#allocation10], 1 }

</bundles_post_ra>
